<compile_context>
chip_gen: v5e
topology: v5e:2x2
jax: 0.10.0
libtpu: 0.0.40
codegen_flags: <defaults>
</compile_context>

<pallas_src>
import jax
import jax.numpy as jnp
from jax.experimental import pallas as pl
from jax.experimental.pallas import tpu as pltpu

_VMEM_BUDGET = 10 * 1024 * 1024         # stay under every chip's default scoped VMEM
_RESIDENT_ITEM_LIMIT = 3 * 1024 * 1024  # bf16 item table small enough to keep resident


def _round_up(x, m):
    return ((x + m - 1) // m) * m


def _rating_kernel(u_ref, it_ref, o_ref):
    # u_ref:  (tm, D)  bf16 gathered user embeddings
    # it_ref: (tn, D)  bf16 item embeddings (NOT transposed; contract last dims)
    # o_ref:  (tm, tn) out_dtype sigmoid ratings
    acc = jax.lax.dot_general(
        u_ref[...],
        it_ref[...],
        dimension_numbers=(((1,), (1,)), ((), ())),  # contract shared last dim
        preferred_element_type=jnp.float32,
    )
    # sigmoid(x) = 0.5*tanh(0.5*x) + 0.5  -> single EUP transcendental (vs exp+div),
    # computed in f32, cast only at the store.
    o_ref[...] = (0.5 * jnp.tanh(0.5 * acc) + 0.5).astype(o_ref.dtype)


class BaseModelPallas:
    """Pallas equivalent of BaseModel; only get_user_rating has concrete semantics."""

    def __init__(self, all_users, all_items, out_dtype=jnp.bfloat16):
        # TODO(synk): compute()/forward()/loss()/prepare()/train_one_epoch() are
        # abstract `pass` stubs in the reference module; only get_user_rating is
        # concrete, so only it is implemented as a kernel.
        # NOTE: bf16 operands + bf16 output slightly change results vs the f32
        # PyTorch reference (documented; pass out_dtype=jnp.float32 for closer
        # output at 2x the write traffic).
        self.out_dtype = out_dtype
        self._out_bytes = jnp.dtype(out_dtype).itemsize
        self.num_users, self.emb_dim = all_users.shape
        self.num_items = all_items.shape[0]
        N, D = self.num_items, self.emb_dim

        # Hoisted once-per-model casts (constant weights): avoids a full
        # read+write+cast pass over the tables on every call.
        self._users_bf16 = all_users.astype(jnp.bfloat16)
        items_bf16 = all_items.astype(jnp.bfloat16)

        Np128 = _round_up(N, 128)
        item_bytes = Np128 * D * 2
        min_tile_bytes = 2 * (16 * D * 2 + 16 * Np128 * self._out_bytes)
        self._resident = (item_bytes <= _RESIDENT_ITEM_LIMIT
                          and 2 * item_bytes + min_tile_bytes <= _VMEM_BUDGET)

        if self._resident:
            self._tn = None
            Np = Np128  # lane-dense output columns
        else:
            tn = 1024
            while tn > 128 and 2 * (16 * D * 2 + tn * D * 2
                                    + 16 * tn * self._out_bytes) > _VMEM_BUDGET:
                tn //= 2
            self._tn = tn
            Np = _round_up(N, tn)

        if Np != N:
            items_bf16 = jnp.pad(items_bf16, ((0, Np - N), (0, 0)))
        self._items_bf16 = items_bf16  # [Np, D]; zero rows -> sigmoid(0)=0.5, sliced off

    def compute(self):
        return self._users_bf16, self._items_bf16

    def get_user_rating(self, users):
        # Row gather stays in XLA (~B*D bytes, negligible vs the B*N output stream).
        users_emb = jnp.take(self._users_bf16, users.astype(jnp.int32), axis=0)  # [B, D]
        B, D = users_emb.shape
        N = self.num_items
        Np = self._items_bf16.shape[0]
        ob = self._out_bytes

        if self._resident:
            fixed = 2 * Np * D * 2                 # resident item table (2 buffers)
            per_tm = 2 * (D * 2 + Np * ob)         # double-buffered user + out tiles
            tm = max(16, min(512,
                             ((_VMEM_BUDGET - fixed) // per_tm) // 16 * 16,
                             _round_up(B, 16)))
            # v7x megacore: give both TensorCores at least one grid step if possible.
            if _round_up(B, tm) // tm < 2 and tm > 16:
                tm = max(16, _round_up(pl.cdiv(B, 2), 16))
            Bp = _round_up(B, tm)
            grid = (Bp // tm,)
            in_specs = [pl.BlockSpec((tm, D), lambda i: (i, 0)),
                        pl.BlockSpec((Np, D), lambda i: (0, 0))]  # constant -> DMA'd once
            out_specs = pl.BlockSpec((tm, Np), lambda i: (i, 0))
            dims = ("parallel",)
            item_reads = 1
        else:
            tn = self._tn
            avail = _VMEM_BUDGET - 2 * tn * D * 2
            per_tm = 2 * (D * 2 + tn * ob)
            tm = max(16, min(512, (avail // per_tm) // 16 * 16, _round_up(B, 16)))
            Bp = _round_up(B, tm)
            grid = (Bp // tm, Np // tn)
            in_specs = [pl.BlockSpec((tm, D), lambda i, j: (i, 0)),
                        pl.BlockSpec((tn, D), lambda i, j: (j, 0))]
            out_specs = pl.BlockSpec((tm, tn), lambda i, j: (i, j))
            dims = ("parallel", "parallel")
            item_reads = Bp // tm

        if Bp != B:
            users_emb = jnp.pad(users_emb, ((0, Bp - B), (0, 0)))

        cost = pl.CostEstimate(
            flops=2 * Bp * Np * D,
            transcendentals=Bp * Np,  # one tanh per output element
            bytes_accessed=Bp * D * 2 + item_reads * Np * D * 2 + Bp * Np * ob,
        )

        out = pl.pallas_call(
            _rating_kernel,
            out_shape=jax.ShapeDtypeStruct((Bp, Np), self.out_dtype),
            grid=grid,
            in_specs=in_specs,
            out_specs=out_specs,
            compiler_params=pltpu.CompilerParams(dimension_semantics=dims),
            cost_estimate=cost,
        )(users_emb, self._items_bf16)

        if Bp != B or Np != N:
            out = out[:B, :N]
        return out


if __name__ == "__main__":
    # Deterministic synthetic "checkpoint": user / item embedding tables.
    key = jax.random.PRNGKey(0)
    k_users, k_items, k_idx = jax.random.split(key, 3)

    num_users, num_items, emb_dim = 64, 256, 32
    batch = 16

    all_users = jax.random.normal(k_users, (num_users, emb_dim), dtype=jnp.float32)
    all_items = jax.random.normal(k_items, (num_items, emb_dim), dtype=jnp.float32)
    users = jax.random.randint(k_idx, (batch,), 0, num_users, dtype=jnp.int32)

    model = BaseModelPallas(all_users, all_items)  # bf16 ratings by default
    rating = model.get_user_rating(users)
    rating = jax.block_until_ready(rating)

    # Reference check against plain JAX f32 (mirrors the torch semantics).
    # Tolerance covers the bf16 operand cast and the bf16 output store.
    ref = jax.nn.sigmoid(jnp.take(all_users, users, axis=0) @ all_items.T)
    assert rating.shape == (batch, num_items)
    err = float(jnp.max(jnp.abs(rating.astype(jnp.float32) - ref)))
    assert err < 2.5e-2, err

    print("KERNEL_OK")
</pallas_src>

<mosaic_0001>
module attributes {stable_mosaic.version = 11 : i64} {
  func.func @_rating_kernel(%arg0: i32, %arg1: memref<16x32xbf16, #tpu.memory_space<vmem>>, %arg2: memref<256x32xbf16, #tpu.memory_space<vmem>>, %arg3: memref<16x256xbf16, #tpu.memory_space<vmem>>) attributes {dimension_semantics = [#tpu.dimension_semantics<parallel>], iteration_bounds = array<i64: 1>, scalar_prefetch = 0 : i64, scratch_operands = 0 : i64, tpu.core_type = #tpu.core_type<tc>, window_params = [{transform_indices = @transform_0, window_bounds = array<i64: 16, 32>}, {pipeline_mode = #tpu.pipeline_mode<synchronous>, transform_indices = @transform_1, window_bounds = array<i64: 256, 32>}, {transform_indices = @transform_2, window_bounds = array<i64: 16, 256>}]} {
    %c0 = arith.constant 0 : index
    %c0_0 = arith.constant 0 : index
    %0 = vector.load %arg1[%c0, %c0_0] : memref<16x32xbf16, #tpu.memory_space<vmem>>, vector<16x32xbf16>
    %c0_1 = arith.constant 0 : index
    %c0_2 = arith.constant 0 : index
    %1 = vector.load %arg2[%c0_1, %c0_2] : memref<256x32xbf16, #tpu.memory_space<vmem>>, vector<256x32xbf16>
    %cst = arith.constant dense<0.000000e+00> : vector<16x256xf32>
    %2 = tpu.matmul %0, %1, %cst {dimension_numbers = #tpu.dot_dimension_numbers<[1], [1], [0], [0], [0, 0, 1, 0], [], []>} : vector<16x32xbf16>, vector<256x32xbf16>, vector<16x256xf32> -> vector<16x256xf32>
    %cst_3 = arith.constant 5.000000e-01 : f32
    %3 = vector.broadcast %cst_3 : f32 to vector<16x256xf32>
    %4 = arith.mulf %3, %2 : vector<16x256xf32>
    %5 = math.tanh %4 : vector<16x256xf32>
    %cst_4 = arith.constant 5.000000e-01 : f32
    %6 = vector.broadcast %cst_4 : f32 to vector<16x256xf32>
    %7 = arith.mulf %6, %5 : vector<16x256xf32>
    %cst_5 = arith.constant 5.000000e-01 : f32
    %8 = vector.broadcast %cst_5 : f32 to vector<16x256xf32>
    %9 = arith.addf %7, %8 : vector<16x256xf32>
    %10 = arith.truncf %9 : vector<16x256xf32> to vector<16x256xbf16>
    %c0_6 = arith.constant 0 : index
    %c0_7 = arith.constant 0 : index
    %11 = vector.load %arg3[%c0_6, %c0_7] : memref<16x256xbf16, #tpu.memory_space<vmem>>, vector<16x256xbf16>
    tpu.vector_store %arg3[%c0_6, %c0_7], %10 {strides = array<i32>} : memref<16x256xbf16, #tpu.memory_space<vmem>>, vector<16x256xbf16>,
    return
  }
  func.func @transform_0(%arg0: i32) -> (i32, i32) {
    %c0_i32 = arith.constant 0 : i32
    %c0_i32_0 = arith.constant 0 : i32
    return %arg0, %c0_i32 : i32, i32
  }
  func.func @transform_1(%arg0: i32) -> (i32, i32) {
    %c0_i32 = arith.constant 0 : i32
    %c0_i32_0 = arith.constant 0 : i32
    %c0_i32_1 = arith.constant 0 : i32
    return %c0_i32, %c0_i32_0 : i32, i32
  }
  func.func @transform_2(%arg0: i32) -> (i32, i32) {
    %c0_i32 = arith.constant 0 : i32
    %c0_i32_0 = arith.constant 0 : i32
    return %arg0, %c0_i32 : i32, i32
  }
}

</mosaic_0001>

<bundles_post_ra>
// kernel: tpu_custom_call.1
= control target key start
LH: loop header
LB: loop body
LE: loop exit
PB: predicated region body
PF: predicated region fallthrough
CT: control target
= control target key end

     0   :  { %vm131_vm0 = vcmask 261120   ;;  %s463_s0 = inlined_call_operand.vmem [shape: bf16[16,32], index: 0, kind: input, shape index: {}]   ;;  %s464_s1 = inlined_call_operand.vmem [shape: bf16[256,32], index: 1, kind: input, shape index: {}]   ;;  %s465_s2 = inlined_call_operand.hbm [shape: bf16[16,256], index: 2, kind: output, shape index: {}]  }
   0x1   :  { %v327_v0 = vld [vmem:[%s464_s1 + $0x38] sm:$0xff]  ;;  %v326_v4 = vld [vmem:[%s464_s1 + $0x30] sm:$0xff] }
   0x2   :  { %v335_v1 = vld [vmem:[%s464_s1 + $0x78] sm:$0xff]  ;;  %v157_v2 = vsel %vm131_vm0, %v327_v0, 0  ;;  %v334_v5 = vld [vmem:[%s464_s1 + $0x70] sm:$0xff] }
   0x3   :  { %v181_v3 = vsel %vm131_vm0, %v335_v1, 0  ;;  %183 = vmatpush.bf16.xpose.msra.mxu0 %v157_v2 }
   0x4   :  { %197 = vmatpush.bf16.xpose.msra.mxu1 %v181_v3 }
   0x5   :  { %7 = vsyncpa [#allocation3], 0  ;;  %v154_v6 = vsel %vm131_vm0, %v326_v4, 0  ;;  %v178_v7 = vsel %vm131_vm0, %v334_v5, 0  ;;  %v325_v8 = vld [vmem:[%s464_s1 + $0x28] sm:$0xff]  ;;  %v324_v12 = vld [vmem:[%s464_s1 + $0x20] sm:$0xff] }
   0x6   :  { %v333_v9 = vld [vmem:[%s464_s1 + $0x68] sm:$0xff]  ;;  %v151_v10 = vsel %vm131_vm0, %v325_v8, 0  ;;  %v332_v13 = vld [vmem:[%s464_s1 + $0x60] sm:$0xff]  ;;  %v148_v14 = vsel %vm131_vm0, %v324_v12, 0  ;;  %v323_v16 = vld [vmem:[%s464_s1 + $0x18] sm:$0xff]  ;;  %s237_s17 = sshll.u32 %s465_s2, 4  ;;  %s238_s17 = int_to_ptr.hbm [resolvable:$true] %s237_s17 }
   0x7   :  { %v175_v11 = vsel %vm131_vm0, %v333_v9, 0  ;;  %v172_v15 = vsel %vm131_vm0, %v332_v13, 0  ;;  %v331_v17 = vld [vmem:[%s464_s1 + $0x58] sm:$0xff]  ;;  %v145_v18 = vsel %vm131_vm0, %v323_v16, 0  ;;  %v322_v20 = vld [vmem:[%s464_s1 + $0x10] sm:$0xff]  ;;  %v321_v24 = vld [vmem:[%s464_s1 + $0x8] sm:$0xff] }
   0x8   :  { %v169_v19 = vsel %vm131_vm0, %v331_v17, 0  ;;  %v330_v21 = vld [vmem:[%s464_s1 + $0x50] sm:$0xff]  ;;  %v142_v22 = vsel %vm131_vm0, %v322_v20, 0  ;;  %v329_v25 = vld [vmem:[%s464_s1 + $0x48] sm:$0xff]  ;;  %v139_v26 = vsel %vm131_vm0, %v321_v24, 0  ;;  %v320_v28 = vld [vmem:[%s464_s1] sm:$0xff] }
   0x9   :  { %v166_v23 = vsel %vm131_vm0, %v330_v21, 0  ;;  %v163_v27 = vsel %vm131_vm0, %v329_v25, 0  ;;  %v328_v29 = vld [vmem:[%s464_s1 + $0x40] sm:$0xff]  ;;  %v136_v30 = vsel %vm131_vm0, %v320_v28, 0  ;;  %s374_s18 = smov 128   ;;  %s375_s19 = smov 8  }
   0xa   :  { %v160_v31 = vsel %vm131_vm0, %v328_v29, 0  ;;  %v319_v32 = vld [vmem:[%s463_s0] sm:$0xff]  ;;  %s373_s0 = smov [#allocation2]  }
   0xb   :  { %184 = vmatpush.bf16.xpose.msra.mxu0 %v154_v6  ;;  %s235_s1 = sshll.u32 %s373_s0, 4  ;;  %s236_s1 = int_to_ptr.vmem [resolvable:$true] %s235_s1 }
   0xc   :  { %198 = vmatpush.bf16.xpose.msra.mxu1 %v178_v7 }
  0x13   :  { %185 = vmatpush.bf16.xpose.msra.mxu0 %v151_v10 }
  0x14   :  { %199 = vmatpush.bf16.xpose.msra.mxu1 %v175_v11 }
  0x1b   :  { %186 = vmatpush.bf16.xpose.msra.mxu0 %v148_v14 }
  0x1c   :  { %200 = vmatpush.bf16.xpose.msra.mxu1 %v172_v15 }
  0x23   :  { %187 = vmatpush.bf16.xpose.msra.mxu0 %v145_v18 }
  0x24   :  { %201 = vmatpush.bf16.xpose.msra.mxu1 %v169_v19 }
  0x2b   :  { %188 = vmatpush.bf16.xpose.msra.mxu0 %v142_v22 }
  0x2c   :  { %202 = vmatpush.bf16.xpose.msra.mxu1 %v166_v23 }
  0x33   :  { %189 = vmatpush.bf16.xpose.msra.mxu0 %v139_v26 }
  0x34   :  { %203 = vmatpush.bf16.xpose.msra.mxu1 %v163_v27 }
  0x3b   :  { %190 = vmatpush.bf16.xpose.msra.mxu0 %v136_v30 }
  0x3c   :  { %204 = vmatpush.bf16.xpose.msra.mxu1 %v160_v31 }
  0x42   :  { %317 = vmatmul.msk.bf16.vlgmr.msra.gmra.mxu0 %vm131_vm0, %v319_v32 }
  0x43   :  { %318 = vmatmul.msk.bf16.vlgmr.msra.gmra.mxu1 %vm131_vm0, %v319_v32 }
  0xbf   :  { %v192_v33 = vpop.f32.mrf.mxu0 }
  0xc0   :  { %v206_v34 = vpop.f32.mrf.mxu1  ;;  %v211_v35 = vmul.f32 0.5, %v192_v33 }
  0xc1   :  { %v212_v36 = vmul.f32 0.5, %v206_v34 }
  0xc2   :  { %339 = vtanh.f32 %v211_v35 }
  0xc3   :  { %341 = vtanh.f32 %v212_v36 }
  0xc7   :  { %v194_v37 = vpop.f32.mrf.mxu0 }
  0xc8   :  { %v208_v38 = vpop.f32.mrf.mxu1  ;;  %v340_v39 = vpop.eup %339  ;;  %v213_v40 = vmul.f32 0.5, %v194_v37 }
  0xc9   :  { %v214_v41 = vmul.f32 0.5, %v208_v38  ;;  %v342_v42 = vpop.eup %341  ;;  %v219_v43 = vmul.f32 0.5, %v340_v39 }
  0xca   :  { %v220_v44 = vmul.f32 0.5, %v342_v42  ;;  %343 = vtanh.f32 %v213_v40 }
  0xcb   :  { %v223_v45 = vadd.f32 0.5, %v219_v43  ;;  %345 = vtanh.f32 %v214_v41 }
  0xcc   :  { %v224_v46 = vadd.f32 0.5, %v220_v44 }
  0xce   :  { %v227_v47 = vpack.c.bf16 %v224_v46, %v223_v45 }
  0xd0   :  { %v344_v48 = vpop.eup %343  ;;  %229 = vst [vmem:[#allocation2] sm:$0xff] %v227_v47 }
  0xd1   :  { %v346_v49 = vpop.eup %345  ;;  %v221_v50 = vmul.f32 0.5, %v344_v48 }
  0xd2   :  { %v222_v51 = vmul.f32 0.5, %v346_v49 }
  0xd3   :  { %v225_v52 = vadd.f32 0.5, %v221_v50 }
  0xd4   :  { %v226_v53 = vadd.f32 0.5, %v222_v51 }
  0xd6   :  { %v228_v54 = vpack.c.bf16 %v226_v53, %v225_v52 }
  0xd8   :  { %230 = vst [vmem:[#allocation2 + $0x8] sm:$0xff] %v228_v54 }
  0xd9   :  { %243 = dma.vmem_to_hbm [thread:$0]  %s236_s1, 256, %s238_s17, [#allocation3], %s374_s18, %s374_s18, %s375_s19  }
  0xda   :  { %371 = dma.done.wait [#allocation3], 256  }
  0xdb   :  { %372 = vsyncadd [#allocation3], 4294967040 }
  0xdc   :  { %248 = vsyncpa [#allocation3], 1 }

</bundles_post_ra>
